<compile_context>
chip_gen: v5e
topology: v5e:2x2
jax: 0.10.0
libtpu: 0.0.40
codegen_flags: <defaults>
</compile_context>

<pallas_src>
import jax
import jax.numpy as jnp
from jax import lax
from jax.experimental import pallas as pl
from jax.experimental.pallas import tpu as pltpu

LEAKY_SLOPE = 0.01      # nn.LeakyReLU() default negative_slope
BN_EPS = 1e-5           # nn.BatchNorm2d default eps

_TILE_HW_MAX = 32768            # max lanes per grid step (amortizes per-step overhead on v7x)
_VMEM_BUDGET = 12 * 1024 * 1024  # conservative vs v5e's 16 MiB default scoped VMEM


def _round_up(x, mult):
    return ((x + mult - 1) // mult) * mult


# ---------------------------------------------------------------------------
# Pass 1: conv-as-GEMM + bias + LeakyReLU + per-tile BN partial statistics
#   patches block (1, Ckk, tile_hw) bf16, weights (C_out, Ckk) bf16 resident,
#   y written bf16, stats written as centred [sum(d), sum(d^2)], d = y - leaky(bias).
# ---------------------------------------------------------------------------
def _conv_lrelu_stats_kernel(p_ref, w_ref, b_ref, y_ref, s_ref):
    b = b_ref[...]                                        # (C_out, 1) f32
    # (C_out, Ckk) @ (Ckk, tile_hw) on the MXU, bf16 inputs, f32 accumulation.
    y = jnp.dot(w_ref[...], p_ref[0], preferred_element_type=jnp.float32)
    y = y + b
    y = jnp.where(y >= 0.0, y, LEAKY_SLOPE * y)           # LeakyReLU (f32, VPU)
    y_ref[0] = y.astype(y_ref.dtype)                      # bf16 intermediate (halved traffic)

    # Centred partial statistics.  Zero-padded patch columns give y == leaky(bias)
    # exactly, so d == 0 there -> no masking needed anywhere.
    y0 = jnp.where(b >= 0.0, b, LEAKY_SLOPE * b)          # activation of an all-zero column
    d = y - y0
    s_ref[0, 0, :, 0:1] = jnp.sum(d, axis=1, keepdims=True)
    s_ref[0, 0, :, 1:2] = jnp.sum(d * d, axis=1, keepdims=True)


# ---------------------------------------------------------------------------
# Pass 2: apply the folded batch-norm affine  out = y * a + b   (lane-dense, f32 out)
# ---------------------------------------------------------------------------
def _bn_apply_kernel(y_ref, ab_ref, o_ref):
    o_ref[0] = y_ref[0].astype(jnp.float32) * ab_ref[:, 0:1] + ab_ref[:, 1:2]


def _pick_hw_tiling(n, hw, ckk, c_out):
    """Choose (tile_hw, grid_hw, hw_pad) from the VMEM budget and the TC count."""
    hw128 = _round_up(hw, 128)
    # Double-buffered per-lane bytes of the streamed pass-1 blocks (bf16 patches in,
    # bf16 y out).  Weights / bias / stats are tiny and resident.
    per_lane = 2 * 2 * (ckk + c_out)
    t_budget = max(128, (_VMEM_BUDGET // per_lane) // 128 * 128)
    t_max = min(t_budget, _TILE_HW_MAX, hw128)
    grid_hw = pl.cdiv(hw128, t_max)
    # v7x has 2 TensorCores; make sure the "parallel" grid has >= 2 steps when possible.
    if n * grid_hw < 2 and hw128 >= 256:
        grid_hw = 2
    tile_hw = _round_up(pl.cdiv(hw, grid_hw), 128)
    return tile_hw, grid_hw, grid_hw * tile_hw


def _build_patches(x, kernel, stride, pad, h_out, w_out, hw_pad):
    """x: (N, C, H, W) f32 -> patches (N, C*k*k, hw_pad) bf16 (Ckk ordered as (C, ki, kj))."""
    n, c, _, _ = x.shape
    xp = jnp.pad(x, ((0, 0), (0, 0), (pad, pad), (pad, pad))).astype(jnp.bfloat16)
    taps = [
        xp[:, :, ki:ki + stride * h_out:stride, kj:kj + stride * w_out:stride]
        for ki in range(kernel) for kj in range(kernel)
    ]
    pat = jnp.stack(taps, axis=2)                         # (N, C, k*k, H_out, W_out)
    pat = pat.reshape(n, c * kernel * kernel, h_out * w_out)
    hw = h_out * w_out
    if hw_pad != hw:
        pat = jnp.pad(pat, ((0, 0), (0, 0), (0, hw_pad - hw)))
    return pat


def down_forward(x, weight, bias, gamma, beta, *, kernel=3, stride=2, pad=1):
    """x: (N, C_in, H, W) f32.  weight: (C_out, C_in, k, k).  Returns NCHW f32."""
    n, c_in, h, w = x.shape
    c_out = weight.shape[0]
    ckk = c_in * kernel * kernel

    h_out = (h + 2 * pad - kernel) // stride + 1
    w_out = (w + 2 * pad - kernel) // stride + 1
    hw = h_out * w_out

    tile_hw, grid_hw, hw_pad = _pick_hw_tiling(n, hw, ckk, c_out)

    pat = _build_patches(x, kernel, stride, pad, h_out, w_out, hw_pad)   # (N, Ckk, hw_pad) bf16
    w_t = weight.reshape(c_out, ckk).astype(jnp.bfloat16)                # (C_out, Ckk)
    b_col = bias.reshape(c_out, 1).astype(jnp.float32)

    # ---------------- Pass 1: conv + bias + LeakyReLU + partial stats ----------------
    y_bf, stats_part = pl.pallas_call(
        _conv_lrelu_stats_kernel,
        out_shape=(
            jax.ShapeDtypeStruct((n, c_out, hw_pad), jnp.bfloat16),      # pre-BN activation
            jax.ShapeDtypeStruct((n, grid_hw, c_out, 2), jnp.float32),   # per-tile [sum d, sum d^2]
        ),
        grid=(n, grid_hw),
        in_specs=[
            pl.BlockSpec((1, ckk, tile_hw), lambda b, j: (b, 0, j)),     # patches tile (streamed)
            pl.BlockSpec((c_out, ckk), lambda b, j: (0, 0)),             # weights (resident)
            pl.BlockSpec((c_out, 1), lambda b, j: (0, 0)),               # bias (resident)
        ],
        out_specs=(
            pl.BlockSpec((1, c_out, tile_hw), lambda b, j: (b, 0, j)),
            pl.BlockSpec((1, 1, c_out, 2), lambda b, j: (b, j, 0, 0)),
        ),
        compiler_params=pltpu.CompilerParams(
            dimension_semantics=("parallel", "parallel")),
        cost_estimate=pl.CostEstimate(
            flops=2 * c_out * ckk * n * hw_pad,
            transcendentals=0,
            bytes_accessed=(n * ckk * hw_pad * 2 + n * c_out * hw_pad * 2
                            + c_out * ckk * 2 + n * grid_hw * c_out * 2 * 4),
        ),
    )(pat, w_t, b_col)

    # Fold training-mode batch statistics (biased variance over N*H_out*W_out) into a
    # single per-channel scale/shift.  O(C_out) work with plain jnp between the passes.
    # Padded columns contributed exactly 0 to the centred sums, so no correction needed.
    s = jnp.sum(stats_part, axis=(0, 1))                  # (C_out, 2), f32 accumulation
    m_total = n * hw
    y0 = jnp.where(bias >= 0.0, bias, LEAKY_SLOPE * bias)
    d_mean = s[:, 0] / m_total
    mean = y0 + d_mean
    var = jnp.maximum(s[:, 1] / m_total - d_mean * d_mean, 0.0)
    a = gamma * lax.rsqrt(var + BN_EPS)
    b_aff = beta - mean * a
    ab = jnp.stack([a, b_aff], axis=1).astype(jnp.float32)   # packed (C_out, 2) BN params

    # ---------------- Pass 2: affine apply, already in (N, C, HW) layout --------------
    out_pad = pl.pallas_call(
        _bn_apply_kernel,
        out_shape=jax.ShapeDtypeStruct((n, c_out, hw_pad), jnp.float32),
        grid=(n, grid_hw),
        in_specs=[
            pl.BlockSpec((1, c_out, tile_hw), lambda b, j: (b, 0, j)),
            pl.BlockSpec((c_out, 2), lambda b, j: (0, 0)),
        ],
        out_specs=pl.BlockSpec((1, c_out, tile_hw), lambda b, j: (b, 0, j)),
        compiler_params=pltpu.CompilerParams(
            dimension_semantics=("parallel", "parallel")),
        cost_estimate=pl.CostEstimate(
            flops=2 * n * c_out * hw_pad,
            transcendentals=0,
            bytes_accessed=n * c_out * hw_pad * (2 + 4) + c_out * 2 * 4,
        ),
    )(y_bf, ab)

    # Metadata-only when hw is a multiple of 128 (a single small slice-copy otherwise).
    return out_pad[:, :, :hw].reshape(n, c_out, h_out, w_out)


def _reference(x, weight, bias, gamma, beta, *, kernel=3, stride=2, pad=1):
    """Plain-JAX reference matching the PyTorch module (training-mode BN)."""
    y = lax.conv_general_dilated(
        x, weight, window_strides=(stride, stride),
        padding=((pad, pad), (pad, pad)),
        dimension_numbers=("NCHW", "OIHW", "NCHW"),
    ) + bias.reshape(1, -1, 1, 1)
    y = jnp.where(y >= 0, y, LEAKY_SLOPE * y)
    mean = jnp.mean(y, axis=(0, 2, 3), keepdims=True)
    var = jnp.mean((y - mean) ** 2, axis=(0, 2, 3), keepdims=True)
    y = (y - mean) / jnp.sqrt(var + BN_EPS)
    return y * gamma.reshape(1, -1, 1, 1) + beta.reshape(1, -1, 1, 1)


if __name__ == "__main__":
    key = jax.random.PRNGKey(0)
    N, C_IN, C_OUT, H, W = 2, 4, 8, 16, 16
    K = 3

    k_x, k_w, k_b = jax.random.split(key, 3)
    x = jax.random.normal(k_x, (N, C_IN, H, W), dtype=jnp.float32)

    # Deterministic synthetic parameters (shapes per nn.Conv2d / nn.BatchNorm2d init).
    fan_in = C_IN * K * K
    bound = 1.0 / (fan_in ** 0.5)
    weight = jax.random.uniform(k_w, (C_OUT, C_IN, K, K), jnp.float32, -bound, bound)
    bias = jax.random.uniform(k_b, (C_OUT,), jnp.float32, -bound, bound)
    gamma = jnp.ones((C_OUT,), jnp.float32)   # BatchNorm2d default init
    beta = jnp.zeros((C_OUT,), jnp.float32)

    out = down_forward(x, weight, bias, gamma, beta, kernel=K, stride=2, pad=1)
    out = jax.block_until_ready(out)
    assert out.shape == (N, C_OUT, H // 2, W // 2), out.shape

    # Check against the same math at the kernel's declared input precision (bf16 inputs);
    # tolerance accounts for the extra bf16 round-trip of the pre-BN intermediate.
    x_bf = x.astype(jnp.bfloat16).astype(jnp.float32)
    w_bf = weight.astype(jnp.bfloat16).astype(jnp.float32)
    ref_bf16 = _reference(x_bf, w_bf, bias, gamma, beta, kernel=K, stride=2, pad=1)
    err_bf16 = float(jnp.max(jnp.abs(out - ref_bf16)))
    assert jnp.allclose(out, ref_bf16, atol=5e-2, rtol=5e-2), err_bf16

    # Loose sanity check against the full-f32 PyTorch-equivalent reference.
    ref_f32 = _reference(x, weight, bias, gamma, beta, kernel=K, stride=2, pad=1)
    err_f32 = float(jnp.max(jnp.abs(out - ref_f32)))
    assert jnp.allclose(out, ref_f32, atol=1.5e-1, rtol=1.5e-1), err_f32

    print("KERNEL_OK")
</pallas_src>

<mosaic_0001>
module attributes {stable_mosaic.version = 11 : i64} {
  func.func @_conv_lrelu_stats_kernel(%arg0: i32, %arg1: i32, %arg2: memref<1x36x128xbf16, #tpu.memory_space<vmem>>, %arg3: memref<8x36xbf16, #tpu.memory_space<vmem>>, %arg4: memref<8x1xf32, #tpu.memory_space<vmem>>, %arg5: memref<1x8x128xbf16, #tpu.memory_space<vmem>>, %arg6: memref<1x1x8x2xf32, #tpu.memory_space<vmem>>) attributes {dimension_semantics = [#tpu.dimension_semantics<parallel>, #tpu.dimension_semantics<parallel>], iteration_bounds = array<i64: 2, 1>, scalar_prefetch = 0 : i64, scratch_operands = 0 : i64, tpu.core_type = #tpu.core_type<tc>, window_params = [{transform_indices = @transform_0, window_bounds = array<i64: 1, 36, 128>}, {pipeline_mode = #tpu.pipeline_mode<synchronous>, transform_indices = @transform_1, window_bounds = array<i64: 8, 36>}, {pipeline_mode = #tpu.pipeline_mode<synchronous>, transform_indices = @transform_2, window_bounds = array<i64: 8, 1>}, {transform_indices = @transform_3, window_bounds = array<i64: 1, 8, 128>}, {transform_indices = @transform_4, window_bounds = array<i64: 1, 1, 8, 2>}]} {
    %c0 = arith.constant 0 : index
    %c0_0 = arith.constant 0 : index
    %0 = vector.load %arg4[%c0, %c0_0] : memref<8x1xf32, #tpu.memory_space<vmem>>, vector<8x1xf32>
    %c0_1 = arith.constant 0 : index
    %c0_2 = arith.constant 0 : index
    %1 = vector.load %arg3[%c0_1, %c0_2] : memref<8x36xbf16, #tpu.memory_space<vmem>>, vector<8x36xbf16>
    %c0_3 = arith.constant 0 : index
    %c0_4 = arith.constant 0 : index
    %c0_5 = arith.constant 0 : index
    %2 = vector.load %arg2[%c0_3, %c0_4, %c0_5] : memref<1x36x128xbf16, #tpu.memory_space<vmem>>, vector<1x36x128xbf16>
    %3 = vector.shape_cast %2 : vector<1x36x128xbf16> to vector<36x128xbf16>
    %cst = arith.constant dense<0.000000e+00> : vector<8x128xf32>
    %4 = tpu.matmul %1, %3, %cst {dimension_numbers = #tpu.dot_dimension_numbers<[1], [0], [0], [1], [0, 0, 1, 1], [], []>} : vector<8x36xbf16>, vector<36x128xbf16>, vector<8x128xf32> -> vector<8x128xf32>
    %5 = vector.broadcast %0 : vector<8x1xf32> to vector<8x128xf32>
    %6 = arith.addf %4, %5 : vector<8x128xf32>
    %cst_6 = arith.constant 0.000000e+00 : f32
    %7 = vector.broadcast %cst_6 : f32 to vector<8x128xf32>
    %8 = arith.cmpf oge, %6, %7 : vector<8x128xf32>
    %cst_7 = arith.constant 0.00999999977 : f32
    %9 = vector.broadcast %cst_7 : f32 to vector<8x128xf32>
    %10 = arith.mulf %9, %6 : vector<8x128xf32>
    %11 = arith.select %8, %6, %10 : vector<8x128xi1>, vector<8x128xf32>
    %12 = arith.truncf %11 : vector<8x128xf32> to vector<8x128xbf16>
    %c0_8 = arith.constant 0 : index
    %c0_9 = arith.constant 0 : index
    %c0_10 = arith.constant 0 : index
    %13 = vector.load %arg5[%c0_8, %c0_9, %c0_10] : memref<1x8x128xbf16, #tpu.memory_space<vmem>>, vector<1x8x128xbf16>
    %14 = vector.shape_cast %13 : vector<1x8x128xbf16> to vector<8x128xbf16>
    %15 = vector.shape_cast %12 : vector<8x128xbf16> to vector<1x8x128xbf16>
    tpu.vector_store %arg5[%c0_8, %c0_9, %c0_10], %15 {strides = array<i32>} : memref<1x8x128xbf16, #tpu.memory_space<vmem>>, vector<1x8x128xbf16>,
    %cst_11 = arith.constant 0.000000e+00 : f32
    %16 = vector.broadcast %cst_11 : f32 to vector<8x1xf32>
    %17 = arith.cmpf oge, %0, %16 : vector<8x1xf32>
    %cst_12 = arith.constant 0.00999999977 : f32
    %18 = vector.broadcast %cst_12 : f32 to vector<8x1xf32>
    %19 = arith.mulf %18, %0 : vector<8x1xf32>
    %20 = arith.select %17, %0, %19 : vector<8x1xi1>, vector<8x1xf32>
    %21 = vector.broadcast %20 : vector<8x1xf32> to vector<8x128xf32>
    %22 = arith.subf %11, %21 : vector<8x128xf32>
    %cst_13 = arith.constant dense<0.000000e+00> : vector<8xf32>
    %23 = vector.multi_reduction <add>, %22, %cst_13 [1] : vector<8x128xf32> to vector<8xf32>
    %24 = vector.shape_cast %23 : vector<8xf32> to vector<8x1xf32>
    %c0_14 = arith.constant 0 : index
    %c0_15 = arith.constant 0 : index
    %c0_16 = arith.constant 0 : index
    %c0_17 = arith.constant 0 : index
    %25 = vector.load %arg6[%c0_14, %c0_15, %c0_16, %c0_17] : memref<1x1x8x2xf32, #tpu.memory_space<vmem>>, vector<1x1x8x1xf32>
    %26 = vector.shape_cast %25 : vector<1x1x8x1xf32> to vector<8x1xf32>
    %27 = vector.shape_cast %24 : vector<8x1xf32> to vector<1x1x8x1xf32>
    tpu.vector_store %arg6[%c0_14, %c0_15, %c0_16, %c0_17], %27 {strides = array<i32>} : memref<1x1x8x2xf32, #tpu.memory_space<vmem>>, vector<1x1x8x1xf32>,
    %28 = arith.mulf %22, %22 : vector<8x128xf32>
    %cst_18 = arith.constant dense<0.000000e+00> : vector<8xf32>
    %29 = vector.multi_reduction <add>, %28, %cst_18 [1] : vector<8x128xf32> to vector<8xf32>
    %30 = vector.shape_cast %29 : vector<8xf32> to vector<8x1xf32>
    %c0_19 = arith.constant 0 : index
    %c0_20 = arith.constant 0 : index
    %c0_21 = arith.constant 0 : index
    %c1 = arith.constant 1 : index
    %31 = vector.load %arg6[%c0_19, %c0_20, %c0_21, %c1] : memref<1x1x8x2xf32, #tpu.memory_space<vmem>>, vector<1x1x8x1xf32>
    %32 = vector.shape_cast %31 : vector<1x1x8x1xf32> to vector<8x1xf32>
    %33 = vector.shape_cast %30 : vector<8x1xf32> to vector<1x1x8x1xf32>
    tpu.vector_store %arg6[%c0_19, %c0_20, %c0_21, %c1], %33 {strides = array<i32>} : memref<1x1x8x2xf32, #tpu.memory_space<vmem>>, vector<1x1x8x1xf32>,
    return
  }
  func.func @transform_0(%arg0: i32, %arg1: i32) -> (i32, i32, i32) {
    %c0_i32 = arith.constant 0 : i32
    %c0_i32_0 = arith.constant 0 : i32
    return %arg0, %c0_i32, %arg1 : i32, i32, i32
  }
  func.func @transform_1(%arg0: i32, %arg1: i32) -> (i32, i32) {
    %c0_i32 = arith.constant 0 : i32
    %c0_i32_0 = arith.constant 0 : i32
    %c0_i32_1 = arith.constant 0 : i32
    return %c0_i32, %c0_i32_0 : i32, i32
  }
  func.func @transform_2(%arg0: i32, %arg1: i32) -> (i32, i32) {
    %c0_i32 = arith.constant 0 : i32
    %c0_i32_0 = arith.constant 0 : i32
    %c0_i32_1 = arith.constant 0 : i32
    return %c0_i32, %c0_i32_0 : i32, i32
  }
  func.func @transform_3(%arg0: i32, %arg1: i32) -> (i32, i32, i32) {
    %c0_i32 = arith.constant 0 : i32
    %c0_i32_0 = arith.constant 0 : i32
    return %arg0, %c0_i32, %arg1 : i32, i32, i32
  }
  func.func @transform_4(%arg0: i32, %arg1: i32) -> (i32, i32, i32, i32) {
    %c0_i32 = arith.constant 0 : i32
    %c0_i32_0 = arith.constant 0 : i32
    %c0_i32_1 = arith.constant 0 : i32
    return %arg0, %arg1, %c0_i32, %c0_i32_0 : i32, i32, i32, i32
  }
}

</mosaic_0001>

<bundles_post_ra>
// kernel: tpu_custom_call.1
= control target key start
LH: loop header
LB: loop body
LE: loop exit
PB: predicated region body
PF: predicated region fallthrough
CT: control target
= control target key end

     0   :  { %10 = vsyncpa [#allocation3], 0  ;;  %s741_s0 = inlined_call_operand.vmem [shape: bf16[2,36,128], index: 0, kind: input, shape index: {}]   ;;  %s742_s1 = inlined_call_operand.vmem [shape: bf16[8,36], index: 1, kind: input, shape index: {}]   ;;  %s743_s2 = inlined_call_operand.vmem [shape: f32[8,1], index: 2, kind: input, shape index: {}]   ;;  %s744_s3 = inlined_call_operand.hbm [shape: bf16[2,8,128], index: 3, kind: output, shape index: {0}]   ;;  %s745_s4 = inlined_call_operand.vmem [shape: f32[2,1,8,2], index: 4, kind: output, shape index: {1}]  }
   0x1   :  { %12 = vsyncpa [#allocation3 + $0x1], 0  ;;  %s631_s15 = smov 0   ;;  %s633_s16 = smov 0  }
   0x2   :  { %s635_s17 = smov 0   ;;  %s637_s18 = smov 0  }
   0x3   :  { %s639_s19 = smov 0   ;;  %s641_s20 = smov 0  }
   0x4 LB: > { %s444_s21 = sadd.s32 4294967295, %s603_s20   ;;  %s445_s22 = sadd.s32 4294967294, %s603_s20   ;;  %s603_s20 = sphi %s641_s20, %s18_s20   ;;  %s599_s19 = sphi %s639_s19, %s752_s19   ;;  %s595_s18 = sphi %s637_s18, %s751_s18   ;;  %s591_s17 = sphi %s635_s17, %s750_s17   ;;  %s587_s16 = sphi %s633_s16, %s749_s16   ;;  %s583_s15 = sphi %s631_s15, %s748_s15  }
   0x5   : > { %s30_s23 = sadd.s32 1, %s599_s19  ;;  %s109_s24 = sadd.s32 1, %s591_s17 }
   0x6   : > { %p32_p0 = scmp.ge.s32.totalorder %s30_s23, 2  ;;  %p119_p1 = scmp.ne.s32.totalorder %s591_s17, %s587_s16 }
   0x7   : > { %p120_p2 = scmp.eq.s32.totalorder %s444_s21, 1  ;;  %p125_p3 = scmp.ne.s32.totalorder %s587_s16, %s583_s15 }
   0x8   : > { %s754_s23 = smov (%p32_p0, %s30_s23), 0  ;;  %p126_p5 = scmp.eq.s32.totalorder %s445_s22, 1 }
   0x9   : > { %p671_p4 = por %p120_p2, %p119_p1  ;;  %s104_s26 = ssub.s32 %s599_s19, %s754_s23 }
   0xa   : > { %p448_p6 = scmp.ge.s32.totalorder %s603_s20, 1  ;;  %p107_p7 = scmp.eq.s32.totalorder %s104_s26, 0 }
   0xb   : > { %p678_p8 = por %p126_p5, %p125_p3  ;;  %p189_p9 = scmp.lt.s32.totalorder %s603_s20, 3 }
   0xc   : > { %s684_s28 = scalar_select %p107_p7, %s591_s17, %s109_s24  }
   0xd   : > { %p190_p10 = pnand %p448_p6, %p189_p9 }
   0xe   : > { %p225_p11 = scmp.lt.s32.totalorder (!%p190_p10), %s595_s18, 1  ;;  %s213_s12 = sand.u32 (!%p190_p10), 1, %s587_s16  }
   0xf   : > { %193 = sbr.rel (%p190_p10) target bundleno = 300 (0x12c), region = 32  ;;  %s449_s13 = sshll.u32 (!%p190_p10), %s213_s12, 2 }
  0x10   : > { %s462_s14 = sshll.u32 (!%p190_p10), %s595_s18, 2  ;;  %s215_s26 = scalar_lea.vmem (!%p190_p10), [#allocation2], %s449_s13 }
  0x11   : > { %s331_s24 = scalar_lea.hbm (!%p190_p10), %s744_s3, %s462_s14  ;;  %s333_s29 = sshll.u32 (!%p190_p10), %s215_s26, 4  ;;  %s334_s29 = int_to_ptr.vmem [resolvable:$true] %s333_s29 }
  0x12   : > { %s335_s30 = sshll.u32 (!%p190_p10), %s331_s24, 4  ;;  %s545_s10 = scalar_lea.hbm (!%p190_p10), %s744_s3, 8  ;;  %s336_s30 = int_to_ptr.hbm [resolvable:$true] %s335_s30 }
  0x14   : > { %v241_v0 = vld [vmem:[%s743_s2] sm:$0xff]  ;;  %v605_v1 = vmov 0   ;;  %s691_s5 = scalar_select %p225_p11, %s595_s18, 1  ;;  %vm272_vm1 = vcmask 1041408   ;;  %vm268_vm2 = vcmask 293888  }
  0x15   : > { %524 = vset.pattern.permute.xlu0 %v605_v1  ;;  %v295_v2 = vmul.f32 0.01, %v241_v0  ;;  %vm294_vm0 = vcmp.ge.f32.partialorder %v241_v0, 0.0  ;;  %v242_v10 = vld [vmem:[%s742_s1] sm:$0xf]  ;;  %s313_s18 = scalar_lea.sflag [#allocation3], %s213_s12 }
  0x16   : > { %250 = vperm.xlu0 %524, %v241_v0   ;;  %s467_s6 = smul.u32 20, %s691_s5 }
  0x17   : > { %v296_v4 = vsel %vm294_vm0, %v241_v0, %v295_v2 }
  0x18   : > { %s232_s9 = scalar_lea.vmem %s741_s0, %s467_s6  ;;  %s539_s6 = sshra.s32 %s336_s30, 4  ;;  %s540_s6 = int_to_ptr.hbm [resolvable:$true] %s539_s6 }
  0x19   : > { %v247_v3 = vld [vmem:[%s232_s9 + $0x10] sm:$0x3]  ;;  %v466_v8 = vld [vmem:[%s232_s9 + $0x8] sm:$0xff]  ;;  %v465_v9 = vld [vmem:[%s232_s9] sm:$0xff]  ;;  %s541_s7 = scalar_lea.hbm %s540_s6, 4  ;;  %p546_p1 = scmp.lt.s32.totalorder %s540_s6, %s744_s3 }
  0x1a   : > { %v262_v5 = vunpack.c.l.b16 %v247_v3  ;;  %p542_p12 = scmp.ne.s32.totalorder %s540_s6, %s541_s7  ;;  %p547_p2 = scmp.lt.s32.totalorder %s545_s10, %s541_s7 }
  0x1c   : > { %v265_v6 = vpack.c.b16 %v262_v5, %v262_v5  ;;  %p543_p13 = pnand %p542_p12, %p671_p4  ;;  %p548_p3 = por %p547_p2, %p546_p1 }
  0x1e   : > { %299 = vperm.xlu0 %524, %v296_v4   ;;  %v274_v7 = vsel %vm272_vm1, %v265_v6, 0  ;;  %p544_p0 = pneg %p543_p13 }
  0x1f   : > { %281 = vmatpush.bf16.msra.mxu0 %v274_v7 }
  0x20   : > { %p549_p5 = pnand %p548_p3, %p544_p0 }
  0x23   : > { %282 = vmatpush.bf16.msra.mxu0 %v466_v8 }
  0x27   : > { %283 = vmatpush.bf16.msra.mxu0 %v465_v9 }
  0x2a   : > { %460 = vmatmul.msk.bf16.vlgmr.msra.gmra.mxu0 %vm268_vm2, %v242_v10 }
  0x88   : > { %v251_v11 = vpop.permute.xlu0 %250 }
  0x90   : > { %v300_v15 = vpop.permute.xlu0 %299 }
  0xa7   : > { %v285_v12 = vpop.f32.mrf.mxu0 }
  0xa8   : > { %v286_v13 = vadd.f32 %v285_v12, %v251_v11 }
  0xaa   : > { %v290_v14 = vmul.f32 0.01, %v286_v13  ;;  %vm289_vm3 = vcmp.ge.f32.partialorder %v286_v13, 0.0 }
  0xac   : > { %v291_v16 = vsel %vm289_vm3, %v286_v13, %v290_v14 }
  0xad   : > { %v302_v17 = vsub.f32 %v291_v16, %v300_v15  ;;  %v292_v18 = vpack.c.bf16 %v291_v16, %v291_v16 }
  0xaf   : > { %v287_v19 = vpop.f32.mrf.mxu0  ;;  %303 = vadd.xlane.f32.xlu1 %v302_v17  ;;  %293 = vst [vmem:[%s215_s26] sm:$0xf] %v292_v18 }
  0xb0   : > { %552 = shalt.err (!%p549_p5)
}
  0xb1   : > { %468 = dma.vmem_to_hbm [thread:$0]  (%p671_p4), %s334_s29, 64, %s336_s30, %s313_s18   ;;  %v307_v20 = vmul.f32 %v302_v17, %v302_v17  ;;  %vm305_vm4 = vcmask 7168   ;;  %vm310_vm5 = vcmask 15368  }
  0xb2   : > { %s451_s12 = sshll.u32 %s691_s5, 3 }
  0xb3   : > { %s239_s22 = scalar_lea.vmem %s745_s4, %s451_s12 }
  0xb7   : > { %308 = vadd.xlane.f32.xlu1 %v307_v20 }
 0x122   : > { %v304_v21 = vpop.xlane.xlu1 %303 }
 0x123   : > { %306 = vst.msk [vmem:[%s239_s22] sm:$0xff] %vm305_vm4, %v304_v21 }
 0x12a   : > { %v309_v22 = vpop.xlane.xlu1 %308 }
 0x12b   : > { %311 = vst.msk [vmem:[%s239_s22] sm:$0xff] %vm310_vm5, %v309_v22 }
 0x12c PF: > { %p474_p6 = scmp.ge.s32.totalorder %s603_s20, 2  ;;  %s350_s25 = sand.u32 1, %s583_s15  }
 0x12d   : > { %s351_s5 = scalar_lea.sflag [#allocation3], %s350_s25 }
 0x12e   : > { %p471_p4 = pnand %p474_p6, %p678_p8 }
 0x130   : > { %p472_p7 = pneg %p471_p4 }
 0x132   : > { %578 = dma.done.wait (%p472_p7), %s351_s5, 64  }
 0x133   : > { %580 = vsyncadd (%p472_p7), %s351_s5, 4294967232  ;;  %s18_s20 = sadd.s32 1, %s603_s20   ;;  %s748_s15 = smov %s587_s16 }
 0x134   : > { %p15_p9 = scmp.ge.s32.totalorder %s18_s20, 4   ;;  %s749_s16 = smov %s591_s17 }
 0x135   : > { %s750_s17 = smov %s684_s28  ;;  %s751_s18 = smov %s599_s19 }
 0x136   : > { %s752_s19 = smov %s754_s23  ;;  %17 = sbr.rel (!%p15_p9) target bundleno = 4 (0x4), region = 79 }
 0x13b   :  { %367 = vsyncpa [#allocation3], 1 }
 0x13c   :  { %369 = vsyncpa [#allocation3 + $0x1], 1 }

</bundles_post_ra>
